<compile_context>
chip_gen: v7x
topology: tpu7x:2x2x1
jax: 0.10.0
libtpu: 0.0.40
codegen_flags: <defaults>
</compile_context>

<pallas_src>
import functools

import jax
import jax.numpy as jnp
from jax.experimental import pallas as pl
from jax.experimental.pallas import tpu as pltpu


def _loss_kernel(policy_ref, out_ref, *, true_b, compute_entropy):
    """Per-tile partial sums for cross-entropy and (optionally) entropy."""
    i = pl.program_id(0)

    logits = policy_ref[...].astype(jnp.float32)             # (TB, C)
    TB, C = logits.shape

    # Row-validity mask for a (possibly partial) last tile.  Garbage rows are
    # zeroed BEFORE max/exp so stale/inf junk cannot poison the reductions.
    row_ids = jax.lax.broadcasted_iota(jnp.int32, (TB, 1), 0) + i * TB
    valid_b = row_ids < true_b                                # (TB, 1) bool
    logits = jnp.where(valid_b, logits, 0.0)
    valid = valid_b.astype(jnp.float32)

    # Numerically-stable softmax pieces: one exp per element, nothing else
    # (B, C)-shaped is materialized beyond shifted/expv.
    m = jnp.max(logits, axis=-1, keepdims=True)               # (TB, 1)
    shifted = logits - m                                      # (TB, C)
    expv = jnp.exp(shifted)                                   # EUP: 1 exp/elem
    sumexp = jnp.sum(expv, axis=-1, keepdims=True)            # (TB, 1)
    logz = jnp.log(sumexp)                                    # (TB, 1), tiny

    # Cross-entropy partial: per-row CE = (m + logz) - logit[target].  The
    # target-gather half happens in the wrapper (O(B) take_along_axis), so
    # the kernel only accumulates sum(m + logz) over valid rows.
    ce_sum = jnp.sum(valid * (m + logz))

    if compute_entropy:
        # Entropy partial: -sum p log p = logz - E_p[shifted] per row, with
        # E_p[shifted] = sum(expv * shifted) / sumexp (no probs tensor).
        es_r = jnp.sum(expv * shifted, axis=-1, keepdims=True)  # (TB, 1)
        inv = pl.reciprocal(sumexp)                              # (TB, 1)
        ent_sum = jnp.sum(valid * (logz - es_r * inv))
    else:
        ent_sum = 0.0

    # Lane-dense partial-sum output: lane 0 = CE partial, lane 1 = entropy.
    lane = jax.lax.broadcasted_iota(jnp.int32, (1, 8, 128), 2)
    out_ref[...] = (ce_sum * (lane == 0).astype(jnp.float32)
                    + ent_sum * (lane == 1).astype(jnp.float32))


def _pick_tile(B, C, itemsize):
    """Dtype- and working-set-aware batch tile size."""
    # Per-row VMEM cost: double-buffered input tile (2 * itemsize) plus
    # roughly four f32 (TB, C) temporaries (cast/where, shifted, expv, ...).
    bytes_per_row = C * (2 * itemsize + 16)
    budget = 32 * 1024 * 1024
    tb = budget // max(bytes_per_row, 1)
    tb = max(16, min(1024, (tb // 16) * 16))
    tb = 1 << (tb.bit_length() - 1)        # power of two -> usually divides B
    if B >= 32:
        # Keep >= 2 grid steps so the "parallel" axis can span both v7x TCs.
        half = ((B // 2) + 15) // 16 * 16
        tb = min(tb, max(16, half))
    if tb >= B:
        tb = B                              # single full-extent block
    return tb


@functools.partial(jax.jit, static_argnames=("compute_entropy",))
def _pallas_loss_terms(policy_pred, policy_target, value_pred, value_target,
                       *, compute_entropy):
    B, C = policy_pred.shape
    itemsize = jnp.dtype(policy_pred.dtype).itemsize

    tb = _pick_tile(B, C, itemsize)
    n_blk = pl.cdiv(B, tb)

    kernel = functools.partial(_loss_kernel, true_b=B,
                               compute_entropy=compute_entropy)

    cost = pl.CostEstimate(
        flops=10 * B * C,
        transcendentals=B * C,
        bytes_accessed=B * C * itemsize + n_blk * 8 * 128 * 4,
    )

    partials = pl.pallas_call(
        kernel,
        out_shape=jax.ShapeDtypeStruct((n_blk, 8, 128), jnp.float32),
        grid_spec=pltpu.PrefetchScalarGridSpec(
            num_scalar_prefetch=0,
            grid=(n_blk,),
            in_specs=[pl.BlockSpec((tb, C), lambda i: (i, 0))],
            out_specs=pl.BlockSpec((1, 8, 128), lambda i: (i, 0, 0)),
        ),
        compiler_params=pltpu.CompilerParams(
            dimension_semantics=("parallel",),
            vmem_limit_bytes=48 * 1024 * 1024),
        cost_estimate=cost,
    )(policy_pred)

    sums = jnp.sum(partials[:, 0, :], axis=0)                 # (128,)

    # CE: (sum(m + logz) - sum(logit[target])) / B.  O(B) gather on raw
    # logits, outside the per-element hot path.
    # NOTE: out-of-range targets would clamp here instead of erroring like
    # torch.nn.functional.cross_entropy.
    logit_t = jnp.take_along_axis(
        policy_pred.astype(jnp.float32),
        policy_target.reshape(-1, 1).astype(jnp.int32), axis=-1)
    ce = (sums[0] - jnp.sum(logit_t)) / jnp.float32(B)

    # Value MSE: trivially fused by XLA; keeping it out of the kernel removes
    # two narrow DMA streams per grid step.
    diff = value_pred.astype(jnp.float32) - value_target.astype(jnp.float32)
    mse = jnp.mean(diff * diff)

    ent = sums[1] if compute_entropy else jnp.float32(0.0)
    return ce, mse, ent


class PolicyValueLossPallas:
    """JAX/Pallas port of PolicyValueLoss.forward (tensor terms in-kernel)."""

    def __init__(self,
                 policy_weight=1.0,
                 value_weight=1.0,
                 entropy_weight=0.01,
                 repetition_penalty_weight=2.0,
                 forward_progress_weight=0.5,
                 draw_penalty_weight=0.8,
                 teacher_model=None,
                 temperature=1.0,
                 l2_weight=1e-4):
        self.policy_weight = policy_weight
        self.value_weight = value_weight
        self.entropy_weight = entropy_weight
        self.repetition_penalty_weight = repetition_penalty_weight
        self.forward_progress_weight = forward_progress_weight
        self.draw_penalty_weight = draw_penalty_weight
        self.teacher_model = teacher_model
        self.temperature = temperature
        self.l2_weight = l2_weight

    def __call__(self, policy_pred, value_pred, policy_target, value_target,
                 board_states=None, move_count=0, model=None):
        # Statically specialize on the `model is not None` branch so the
        # no-entropy training config compiles a cheaper kernel variant.
        compute_entropy = model is not None
        ce, mse, ent = _pallas_loss_terms(
            policy_pred, policy_target, value_pred, value_target,
            compute_entropy=compute_entropy)

        entropy = ent if compute_entropy else jnp.float32(0.0)

        # TODO(synk): repetition penalty / forward-progress reward / draw
        # penalty require python-chess board introspection; no tensor
        # equivalent exists, so they are zero scalars here.
        repetition_penalty = jnp.float32(0.0)
        forward_progress_reward = jnp.float32(0.0)
        draw_penalty = jnp.float32(0.0)

        # TODO(synk): KL distillation term needs a teacher nn.Module; omitted
        # (teacher_model is None in this synthetic setup).
        kl_loss = jnp.float32(0.0)

        total_loss = (self.policy_weight * ce
                      + self.value_weight * mse
                      - self.entropy_weight * entropy
                      + repetition_penalty
                      - forward_progress_reward
                      + draw_penalty
                      + kl_loss)

        # Return JAX scalars (no host float() syncs in the training path).
        loss_dict = {
            "total_loss": total_loss,
            "policy_loss": ce,
            "value_loss": mse,
            "entropy": entropy,
            "repetition_penalty": repetition_penalty,
            "forward_progress_reward": forward_progress_reward,
            "draw_penalty": draw_penalty,
            "kl_loss": kl_loss,
        }
        return total_loss, loss_dict


def _reference_terms(policy_pred, policy_target, value_pred, value_target):
    """Pure-JAX reference for verification (mirrors the PyTorch formulas)."""
    logp = jax.nn.log_softmax(policy_pred.astype(jnp.float32), axis=-1)
    ce = -jnp.mean(jnp.take_along_axis(logp, policy_target[:, None], axis=-1))
    mse = jnp.mean((value_pred.astype(jnp.float32)
                    - value_target.astype(jnp.float32)) ** 2)
    p = jax.nn.softmax(policy_pred.astype(jnp.float32), axis=-1)
    ent = -jnp.sum(p * jnp.log(p + 1e-10))
    return ce, mse, ent


def _check_case(key, B, C, model):
    k1, k2, k3, k4 = jax.random.split(key, 4)
    policy_pred = jax.random.normal(k1, (B, C), dtype=jnp.float32)
    policy_target = jax.random.randint(k2, (B,), 0, C, dtype=jnp.int32)
    value_pred = jax.random.normal(k3, (B, 1), dtype=jnp.float32)
    value_target = jax.random.uniform(k4, (B, 1), dtype=jnp.float32) * 2.0 - 1.0

    loss_fn = PolicyValueLossPallas()
    total_loss, loss_dict = loss_fn(
        policy_pred, value_pred, policy_target, value_target,
        board_states=None, move_count=10, model=model)
    jax.block_until_ready(total_loss)

    ce_ref, mse_ref, ent_ref = _reference_terms(
        policy_pred, policy_target, value_pred, value_target)
    ent_used = ent_ref if model is not None else jnp.float32(0.0)
    total_ref = (loss_fn.policy_weight * ce_ref
                 + loss_fn.value_weight * mse_ref
                 - loss_fn.entropy_weight * ent_used)

    assert abs(float(loss_dict["policy_loss"]) - float(ce_ref)) < 1e-4
    assert abs(float(loss_dict["value_loss"]) - float(mse_ref)) < 1e-4
    assert abs(float(loss_dict["entropy"]) - float(ent_used)) < 1e-2
    assert abs(float(total_loss) - float(total_ref)) < 1e-3
    return total_loss


if __name__ == "__main__":
    key = jax.random.PRNGKey(0)
    k_a, k_b = jax.random.split(key)

    # Small synthetic case (single full-extent tile), with entropy enabled.
    _check_case(k_a, B=8, C=128, model=object())

    # Non-divisible batch (exercises the partial-last-tile masking path),
    # entropy statically disabled (model=None branch).
    _check_case(k_b, B=40, C=256, model=None)

    print("KERNEL_OK")
</pallas_src>

<mosaic_0001>
module attributes {stable_mosaic.version = 11 : i64} {
  func.func @_loss_kernel(%arg0: i32, %arg1: memref<8x128xf32, #tpu.memory_space<vmem>>, %arg2: memref<1x8x128xf32, #tpu.memory_space<vmem>>) attributes {dimension_semantics = [#tpu.dimension_semantics<parallel>], iteration_bounds = array<i64: 1>, scalar_prefetch = 0 : i64, scratch_operands = 0 : i64, tpu.core_type = #tpu.core_type<tc>, window_params = [{transform_indices = @transform_0, window_bounds = array<i64: 8, 128>}, {transform_indices = @transform_1, window_bounds = array<i64: 1, 8, 128>}]} {
    %c0 = arith.constant 0 : index
    %c0_0 = arith.constant 0 : index
    %0 = vector.load %arg1[%c0, %c0_0] : memref<8x128xf32, #tpu.memory_space<vmem>>, vector<8x128xf32>
    %1 = tpu.iota {dimensions = array<i32: 0>} : vector<8x1xi32>
    %c8_i32 = arith.constant 8 : i32
    %2 = arith.muli %arg0, %c8_i32 : i32
    %3 = vector.broadcast %2 : i32 to vector<8x1xi32>
    %4 = arith.addi %1, %3 : vector<8x1xi32>
    %c8_i32_1 = arith.constant 8 : i32
    %5 = vector.broadcast %c8_i32_1 : i32 to vector<8x1xi32>
    %6 = arith.cmpi slt, %4, %5 : vector<8x1xi32>
    %cst = arith.constant 0.000000e+00 : f32
    %7 = vector.shape_cast %6 : vector<8x1xi1> to vector<8x1xi1>
    %8 = vector.broadcast %7 : vector<8x1xi1> to vector<8x128xi1>
    %9 = vector.broadcast %cst : f32 to vector<8x128xf32>
    %10 = arith.select %8, %0, %9 : vector<8x128xi1>, vector<8x128xf32>
    %11 = arith.extui %6 : vector<8x1xi1> to vector<8x1xi32>
    %12 = arith.sitofp %11 : vector<8x1xi32> to vector<8x1xf32>
    %cst_2 = arith.constant dense<0xFF800000> : vector<8xf32>
    %13 = vector.multi_reduction <maximumf>, %10, %cst_2 [1] : vector<8x128xf32> to vector<8xf32>
    %14 = vector.shape_cast %13 : vector<8xf32> to vector<8x1xf32>
    %15 = vector.broadcast %14 : vector<8x1xf32> to vector<8x128xf32>
    %16 = arith.subf %10, %15 : vector<8x128xf32>
    %17 = math.exp %16 : vector<8x128xf32>
    %cst_3 = arith.constant dense<0.000000e+00> : vector<8xf32>
    %18 = vector.multi_reduction <add>, %17, %cst_3 [1] : vector<8x128xf32> to vector<8xf32>
    %19 = vector.shape_cast %18 : vector<8xf32> to vector<8x1xf32>
    %20 = math.log %19 : vector<8x1xf32>
    %21 = arith.addf %14, %20 : vector<8x1xf32>
    %22 = arith.mulf %12, %21 : vector<8x1xf32>
    %23 = vector.shape_cast %22 : vector<8x1xf32> to vector<1x8x1xf32>
    %cst_4 = arith.constant dense<0.000000e+00> : vector<1xf32>
    %24 = vector.multi_reduction <add>, %23, %cst_4 [1, 2] : vector<1x8x1xf32> to vector<1xf32>
    %25 = vector.shape_cast %24 : vector<1xf32> to vector<1x1x1xf32>
    %26 = vector.extract %25[0, 0, 0] : f32 from vector<1x1x1xf32>
    %27 = arith.mulf %17, %16 : vector<8x128xf32>
    %cst_5 = arith.constant dense<0.000000e+00> : vector<8xf32>
    %28 = vector.multi_reduction <add>, %27, %cst_5 [1] : vector<8x128xf32> to vector<8xf32>
    %29 = vector.shape_cast %28 : vector<8xf32> to vector<8x1xf32>
    %30 = tpu.reciprocal %19 : vector<8x1xf32> -> vector<8x1xf32>
    %31 = arith.mulf %29, %30 : vector<8x1xf32>
    %32 = arith.subf %20, %31 : vector<8x1xf32>
    %33 = arith.mulf %12, %32 : vector<8x1xf32>
    %34 = vector.shape_cast %33 : vector<8x1xf32> to vector<1x8x1xf32>
    %cst_6 = arith.constant dense<0.000000e+00> : vector<1xf32>
    %35 = vector.multi_reduction <add>, %34, %cst_6 [1, 2] : vector<1x8x1xf32> to vector<1xf32>
    %36 = vector.shape_cast %35 : vector<1xf32> to vector<1x1x1xf32>
    %37 = vector.extract %36[0, 0, 0] : f32 from vector<1x1x1xf32>
    %38 = tpu.iota {dimensions = array<i32: 2>} : vector<1x8x128xi32>
    %c0_i32 = arith.constant 0 : i32
    %39 = vector.broadcast %c0_i32 : i32 to vector<1x8x128xi32>
    %40 = arith.cmpi eq, %38, %39 : vector<1x8x128xi32>
    %41 = arith.extui %40 : vector<1x8x128xi1> to vector<1x8x128xi32>
    %42 = arith.sitofp %41 : vector<1x8x128xi32> to vector<1x8x128xf32>
    %43 = vector.broadcast %26 : f32 to vector<1x8x128xf32>
    %44 = arith.mulf %43, %42 : vector<1x8x128xf32>
    %c1_i32 = arith.constant 1 : i32
    %45 = vector.broadcast %c1_i32 : i32 to vector<1x8x128xi32>
    %46 = arith.cmpi eq, %38, %45 : vector<1x8x128xi32>
    %47 = arith.extui %46 : vector<1x8x128xi1> to vector<1x8x128xi32>
    %48 = arith.sitofp %47 : vector<1x8x128xi32> to vector<1x8x128xf32>
    %49 = vector.broadcast %37 : f32 to vector<1x8x128xf32>
    %50 = arith.mulf %49, %48 : vector<1x8x128xf32>
    %51 = arith.addf %44, %50 : vector<1x8x128xf32>
    %c0_7 = arith.constant 0 : index
    %c0_8 = arith.constant 0 : index
    %c0_9 = arith.constant 0 : index
    %52 = vector.load %arg2[%c0_7, %c0_8, %c0_9] : memref<1x8x128xf32, #tpu.memory_space<vmem>>, vector<1x8x128xf32>
    tpu.vector_store %arg2[%c0_7, %c0_8, %c0_9], %51 {strides = array<i32>} : memref<1x8x128xf32, #tpu.memory_space<vmem>>, vector<1x8x128xf32>,
    return
  }
  func.func @transform_0(%arg0: i32) -> (i32, i32) {
    %c0_i32 = arith.constant 0 : i32
    %c0_i32_0 = arith.constant 0 : i32
    return %arg0, %c0_i32 : i32, i32
  }
  func.func @transform_1(%arg0: i32) -> (i32, i32, i32) {
    %c0_i32 = arith.constant 0 : i32
    %c0_i32_0 = arith.constant 0 : i32
    %c0_i32_1 = arith.constant 0 : i32
    return %arg0, %c0_i32, %c0_i32_0 : i32, i32, i32
  }
}

</mosaic_0001>

<bundles_post_ra>
// kernel: _pallas_loss_terms.1
= control target key start
LH: loop header
LB: loop body
LE: loop exit
PB: predicated region body
PF: predicated region fallthrough
CT: control target
= control target key end

     0   :  { %vm30_vm0 = vcmask 7168   ;;  %v58_v30 = vlaneseq  ;;  %v89_v32 = vmov 0.0   ;;  %s106_s0 = inlined_call_operand.vmem [shape: f32[8,128], index: 0, kind: input, shape index: {}]   ;;  %s107_s1 = inlined_call_operand.vmem [shape: f32[1,8,128], index: 1, kind: output, shape index: {}]  }
   0x1   :  { %v8_v0 = vld [vmem:[%s106_s0] sm:$0xff] }
   0x2   :  { %19 = vmax.xlane.f32.xlu0 %v8_v0  ;;  %v59_v31 = vand.u32 127, %v58_v30 }
   0x4   :  { %vm60_vm1 = vcmp.eq.s32.totalorder %v59_v31, 0  ;;  %vm65_vm2 = vcmp.eq.s32.totalorder %v59_v31, 1 }
   0x5   :  { %v76_v33 = vsel %vm60_vm1, 1.0, %v89_v32  ;;  %v77_v34 = vsel %vm65_vm2, 1.0, %v89_v32 }
  0x8f   :  { %v20_v1 = vpop.xlane.xlu0 %19 }
  0x90   :  { %v21_v2 = vsub.f32 %v8_v0, %v20_v1 }
  0x92   :  { %v22_v3 = vmul.f32 1.442695, %v21_v2 }
  0x94   :  { %83 = vpow2.f32 %v22_v3 }
  0x9e   :  { %v84_v4 = vpop.eup %83 }
  0x9f   :  { %24 = vadd.xlane.f32.xlu0 %v84_v4  ;;  %v41_v5 = vmul.f32 %v84_v4, %v21_v2 }
  0xa1   :  { %42 = vadd.xlane.f32.xlu1 %v41_v5 }
 0x12c   :  { %v25_v6 = vpop.xlane.xlu0 %24 }
 0x12d   :  { %85 = vlog2.f32 %v25_v6 }
 0x12e   :  { %87 = vrcp.f32 %v25_v6  ;;  %v43_v9 = vpop.xlane.xlu1 %42 }
 0x137   :  { %v86_v7 = vpop.eup %85 }
 0x138   :  { %v88_v8 = vpop.eup %87  ;;  %v27_v10 = vmul.f32 0.6931472, %v86_v7 }
 0x139   :  { %v45_v11 = vmul.f32 %v88_v8, %v43_v9 }
 0x13a   :  { %v28_v12 = vadd.f32 %v27_v10, %v20_v1 }
 0x13b   :  { %v46_v13 = vsub.f32 %v27_v10, %v45_v11 }
 0x13c   :  { %v31_v14 = vsel %vm30_vm0, %v28_v12, 0.0 }
 0x13d   :  { %32 = vadd.xlane.f32.xlu1 %v31_v14  ;;  %v48_v15 = vsel %vm30_vm0, %v46_v13, 0.0 }
 0x13e   :  { %49 = vadd.xlane.f32.xlu0 %v48_v15 }
 0x1ca   :  { %v33_v16 = vpop.xlane.xlu1 %32 }
 0x1cb   :  { %v50_v17 = vpop.xlane.xlu0 %49  ;;  %v34_v18 = vrot.slane %v33_v16, 4 }
 0x1cc   :  { %v51_v19 = vrot.slane %v50_v17, 4 }
 0x1cd   :  { %v35_v20 = vadd.f32 %v34_v18, %v33_v16 }
 0x1ce   :  { %v52_v21 = vadd.f32 %v51_v19, %v50_v17 }
 0x1cf   :  { %v36_v22 = vrot.slane %v35_v20, 2 }
 0x1d0   :  { %v53_v23 = vrot.slane %v52_v21, 2 }
 0x1d1   :  { %v37_v24 = vadd.f32 %v36_v22, %v35_v20 }
 0x1d2   :  { %v54_v25 = vadd.f32 %v53_v23, %v52_v21 }
 0x1d3   :  { %v38_v26 = vrot.slane %v37_v24, 1 }
 0x1d4   :  { %v55_v27 = vrot.slane %v54_v25, 1 }
 0x1d5   :  { %v39_v28 = vadd.f32 %v38_v26, %v37_v24 }
 0x1d6   :  { %v56_v29 = vadd.f32 %v55_v27, %v54_v25 }
 0x1d7   :  { %78 = vpush %v39_v28 }
 0x1d8   :  { %80 = vpush %v56_v29 }
 0x208   :  { %s79_s0 = spop %78 }
 0x209   :  { %v63_v35 = vstv %s79_s0  ;;  %s81_s8 = spop %80 }
 0x20a   :  { %v64_v36 = vmul.f32 %v76_v33, %v63_v35  ;;  %v68_v37 = vstv %s81_s8 }
 0x20b   :  { %v69_v38 = vmul.f32 %v77_v34, %v68_v37 }
 0x20d   :  { %v70_v39 = vadd.f32 %v69_v38, %v64_v36 }
 0x20f   :  { %71 = vst [vmem:[%s107_s1] sm:$0xff] %v70_v39 }

</bundles_post_ra>
